<compile_context>
chip_gen: v7x
topology: tpu7x:2x2x1
jax: 0.10.0
libtpu: 0.0.40
codegen_flags: <defaults>
</compile_context>

<pallas_src>
import jax
import jax.numpy as jnp
from jax.experimental import pallas as pl
from jax.experimental.pallas import tpu as pltpu


def _round_up(x: int, m: int) -> int:
    return ((x + m - 1) // m) * m


def mlp_sum_readout_kernel(batch_ref, x_ref, w1_ref, b1_ref, w2_ref, b2_ref,
                           o_ref):
    i = pl.program_id(1)                      # node-tile index within this split

    @pl.when(i == 0)
    def _zero():
        o_ref[...] = jnp.zeros(o_ref.shape, o_ref.dtype)

    # --- MLP hot path: Linear -> ReLU -> Linear (bf16 MXU operands, f32 acc) ---
    h = jnp.dot(x_ref[...], w1_ref[...], preferred_element_type=jnp.float32)
    h = jnp.maximum(h + b1_ref[...], 0.0)                       # f32 VPU work
    h2 = jnp.dot(h.astype(jnp.bfloat16), w2_ref[...],
                 preferred_element_type=jnp.float32) + b2_ref[...]   # (TILE_N, C_out_pad)

    # --- global_add_pool over this node tile: one-hot matmul on the MXU ---
    # Padded / tail nodes carry the sentinel graph id (== G_pad) so they match
    # no iota row and pool into nothing.
    # TODO(synk): for large graph counts G, replace the (G_pad, TILE_N) one-hot
    # compare with scalar-prefetched per-graph row offsets (sorted batch) and
    # pl.ds segment sums; the compare/cast is O(G*TILE_N) VPU work per tile.
    g_pad = o_ref.shape[1]
    tile_n = x_ref.shape[0]
    graph_ids = jax.lax.broadcasted_iota(jnp.int32, (g_pad, tile_n), 0)
    onehot = (batch_ref[...] == graph_ids).astype(jnp.bfloat16)   # exact 0/1
    o_ref[0] += jnp.dot(onehot, h2.astype(jnp.bfloat16),
                        preferred_element_type=jnp.float32)


def mlp_sum_readout(x, batch, params, num_graphs, *, tile_n=1024,
                    num_core_splits=1):
    """x: [N, C_in] float32/bf16, batch: [N] int graph ids in [0, num_graphs)."""
    w1, b1, w2, b2 = params
    n, c_in = x.shape
    c_out = w2.shape[1]

    # Lane/sublane-dense padded sizes.
    c_in_pad = _round_up(c_in, 128)
    c_out_pad = _round_up(c_out, 128)
    g_pad = _round_up(num_graphs, 8)

    # --- generation-aware VMEM budget and node-tile sizing -------------------
    try:
        vmem_cap = int(getattr(pltpu.get_tpu_info(), "vmem_capacity_bytes",
                               64 << 20))
    except Exception:
        vmem_cap = 64 << 20                       # conservative (v7x per-TC)

    # Resident bytes independent of the node tile: single-buffered bf16 weights
    # + f32 biases + the resident f32 output/accumulator block (x2 margin).
    weights_b = (c_in_pad * c_in_pad + c_in_pad * c_out_pad) * 2 \
        + (c_in_pad + c_out_pad) * 4
    out_b = 2 * g_pad * c_out_pad * 4
    # Per node row: double-buffered bf16 x tile + int32 batch tile.
    per_row_b = 2 * (c_in_pad * 2 + 4)

    budget = int(vmem_cap * 0.75)
    avail = max(budget - weights_b - out_b, per_row_b * 128)
    tile_cap = max((avail // per_row_b) // 128 * 128, 128)

    tile_n = _round_up(max(tile_n, 128), 128)
    tile_n = min(tile_n, tile_cap, _round_up(n, 128))

    n_pad = _round_up(n, tile_n * num_core_splits)
    tiles_per_split = n_pad // (tile_n * num_core_splits)

    needed = weights_b + out_b + per_row_b * tile_n + (4 << 20)
    vmem_limit = int(min(max(2 * needed, 8 << 20), int(vmem_cap * 0.9)))

    # --- input / parameter staging -------------------------------------------
    # x: avoid the full padded HBM copy when it is already aligned; otherwise
    # pad channels to 128 lanes and nodes to the tile boundary in one copy.
    if c_in_pad == c_in and n_pad == n:
        x_p = x if x.dtype == jnp.bfloat16 else x.astype(jnp.bfloat16)
    else:
        # TODO(synk): when only the node count is ragged (c_in already 128-
        # aligned), mask tail rows in-kernel instead of materializing this copy.
        x_p = jnp.zeros((n_pad, c_in_pad), jnp.bfloat16).at[:n, :c_in].set(
            x.astype(jnp.bfloat16))

    # batch is tiny (N int32); padded entries get sentinel id g_pad (no graph).
    batch_p = jnp.full((1, n_pad), g_pad, jnp.int32).at[0, :n].set(
        batch.astype(jnp.int32))

    # Weights / biases are small and staged once; padded rows/cols are zero so
    # padded channels stay exactly zero.
    w1_p = jnp.zeros((c_in_pad, c_in_pad), jnp.bfloat16).at[:c_in, :c_in].set(
        w1.astype(jnp.bfloat16))
    b1_p = jnp.zeros((1, c_in_pad), jnp.float32).at[0, :c_in].set(b1.reshape(-1))
    w2_p = jnp.zeros((c_in_pad, c_out_pad), jnp.bfloat16).at[:c_in, :c_out].set(
        w2.astype(jnp.bfloat16))
    b2_p = jnp.zeros((1, c_out_pad), jnp.float32).at[0, :c_out].set(b2.reshape(-1))

    grid = (num_core_splits, tiles_per_split)

    def node_block(s, i):
        return s * tiles_per_split + i

    if num_core_splits > 1:
        # Only meaningful on multi-TensorCore parts (v7x); CORE_PARALLEL is what
        # actually shards this axis across cores.
        dim_sem = (pltpu.CORE_PARALLEL, pltpu.ARBITRARY)
    else:
        dim_sem = ("arbitrary", "arbitrary")

    resident = pl.Buffered(1)     # constant-index blocks: no second buffer

    out = pl.pallas_call(
        mlp_sum_readout_kernel,
        out_shape=jax.ShapeDtypeStruct((num_core_splits, g_pad, c_out_pad),
                                       jnp.float32),
        grid_spec=pltpu.PrefetchScalarGridSpec(
            num_scalar_prefetch=0,
            grid=grid,
            in_specs=[
                pl.BlockSpec((1, tile_n), lambda s, i: (0, node_block(s, i))),
                pl.BlockSpec((tile_n, c_in_pad), lambda s, i: (node_block(s, i), 0)),
                pl.BlockSpec((c_in_pad, c_in_pad), lambda s, i: (0, 0),
                             pipeline_mode=resident),
                pl.BlockSpec((1, c_in_pad), lambda s, i: (0, 0),
                             pipeline_mode=resident),
                pl.BlockSpec((c_in_pad, c_out_pad), lambda s, i: (0, 0),
                             pipeline_mode=resident),
                pl.BlockSpec((1, c_out_pad), lambda s, i: (0, 0),
                             pipeline_mode=resident),
            ],
            out_specs=pl.BlockSpec((1, g_pad, c_out_pad), lambda s, i: (s, 0, 0)),
        ),
        compiler_params=pltpu.CompilerParams(
            dimension_semantics=dim_sem,
            vmem_limit_bytes=vmem_limit,
        ),
    )(batch_p, x_p, w1_p, b1_p, w2_p, b2_p)

    # Combine per-core-split partials (no-op for the default single split),
    # slice off graph / channel padding.
    res = out[0] if num_core_splits == 1 else out.sum(axis=0)
    return res[:num_graphs, :c_out]


def init_params(key, in_channels, out_channels):
    k1, k2, k3, k4 = jax.random.split(key, 4)
    # Deterministic synthetic init; stored already-transposed ([in, out]).
    w1 = jax.random.normal(k1, (in_channels, in_channels), jnp.float32) * 0.1
    b1 = jax.random.normal(k2, (1, in_channels), jnp.float32) * 0.1
    w2 = jax.random.normal(k3, (in_channels, out_channels), jnp.float32) * 0.1
    b2 = jax.random.normal(k4, (1, out_channels), jnp.float32) * 0.1
    return w1, b1, w2, b2


def reference(x, batch, params, num_graphs):
    w1, b1, w2, b2 = params
    h = jnp.maximum(x @ w1 + b1, 0.0)
    h = h @ w2 + b2
    return jax.ops.segment_sum(h, batch, num_segments=num_graphs)


if __name__ == "__main__":
    key = jax.random.PRNGKey(0)
    in_channels, out_channels = 32, 16
    n_nodes, num_graphs = 8, 2

    kx, kp = jax.random.split(key)
    x = jax.random.normal(kx, (n_nodes, in_channels), jnp.float32)
    batch = jnp.array([0, 0, 0, 1, 1, 1, 1, 1], dtype=jnp.int32)
    params = init_params(kp, in_channels, out_channels)

    out = mlp_sum_readout(x, batch, params, num_graphs)
    out = jax.block_until_ready(out)

    ref = reference(x, batch, params, num_graphs)
    assert out.shape == (num_graphs, out_channels)
    # bf16 MXU operands (f32 accumulation) vs the pure-f32 reference.
    assert jnp.allclose(out, ref, atol=3e-2, rtol=3e-2), "mismatch vs reference"
    print("KERNEL_OK")
</pallas_src>

<mosaic_0001>
module attributes {stable_mosaic.version = 11 : i64} {
  func.func @mlp_sum_readout_kernel(%arg0: i32, %arg1: i32, %arg2: memref<1x128xi32, #tpu.memory_space<vmem>>, %arg3: memref<128x128xbf16, #tpu.memory_space<vmem>>, %arg4: memref<128x128xbf16, #tpu.memory_space<vmem>>, %arg5: memref<1x128xf32, #tpu.memory_space<vmem>>, %arg6: memref<128x128xbf16, #tpu.memory_space<vmem>>, %arg7: memref<1x128xf32, #tpu.memory_space<vmem>>, %arg8: memref<1x8x128xf32, #tpu.memory_space<vmem>>) attributes {dimension_semantics = [#tpu.dimension_semantics<arbitrary>, #tpu.dimension_semantics<arbitrary>], iteration_bounds = array<i64: 1, 1>, scalar_prefetch = 0 : i64, scratch_operands = 0 : i64, tpu.core_type = #tpu.core_type<tc>, window_params = [{transform_indices = @transform_0, window_bounds = array<i64: 1, 128>}, {transform_indices = @transform_1, window_bounds = array<i64: 128, 128>}, {pipeline_mode = #tpu.pipeline_mode<synchronous>, transform_indices = @transform_2, window_bounds = array<i64: 128, 128>}, {pipeline_mode = #tpu.pipeline_mode<synchronous>, transform_indices = @transform_3, window_bounds = array<i64: 1, 128>}, {pipeline_mode = #tpu.pipeline_mode<synchronous>, transform_indices = @transform_4, window_bounds = array<i64: 128, 128>}, {pipeline_mode = #tpu.pipeline_mode<synchronous>, transform_indices = @transform_5, window_bounds = array<i64: 1, 128>}, {transform_indices = @transform_6, window_bounds = array<i64: 1, 8, 128>}]} {
    %c0_i32 = arith.constant 0 : i32
    %0 = arith.cmpi eq, %arg1, %c0_i32 : i32
    %1 = arith.extui %0 : i1 to i32
    %c0_i32_0 = arith.constant 0 : i32
    %2 = arith.cmpi ne, %1, %c0_i32_0 : i32
    scf.if %2 {
      %cst_21 = arith.constant 0.000000e+00 : f32
      %32 = vector.broadcast %cst_21 : f32 to vector<1x8x128xf32>
      %c0_22 = arith.constant 0 : index
      %c0_23 = arith.constant 0 : index
      %c0_24 = arith.constant 0 : index
      %33 = vector.load %arg8[%c0_22, %c0_23, %c0_24] : memref<1x8x128xf32, #tpu.memory_space<vmem>>, vector<1x8x128xf32>
      tpu.vector_store %arg8[%c0_22, %c0_23, %c0_24], %32 {strides = array<i32>} : memref<1x8x128xf32, #tpu.memory_space<vmem>>, vector<1x8x128xf32>,
    } else {
    }
    %c0 = arith.constant 0 : index
    %c0_1 = arith.constant 0 : index
    %3 = vector.load %arg3[%c0, %c0_1] : memref<128x128xbf16, #tpu.memory_space<vmem>>, vector<128x128xbf16>
    %c0_2 = arith.constant 0 : index
    %c0_3 = arith.constant 0 : index
    %4 = vector.load %arg4[%c0_2, %c0_3] : memref<128x128xbf16, #tpu.memory_space<vmem>>, vector<128x128xbf16>
    %cst = arith.constant dense<0.000000e+00> : vector<128x128xf32>
    %5 = tpu.matmul %3, %4, %cst {dimension_numbers = #tpu.dot_dimension_numbers<[1], [0], [0], [1], [0, 0, 1, 1], [], []>} : vector<128x128xbf16>, vector<128x128xbf16>, vector<128x128xf32> -> vector<128x128xf32>
    %c0_4 = arith.constant 0 : index
    %c0_5 = arith.constant 0 : index
    %6 = vector.load %arg5[%c0_4, %c0_5] : memref<1x128xf32, #tpu.memory_space<vmem>>, vector<1x128xf32>
    %7 = vector.broadcast %6 : vector<1x128xf32> to vector<128x128xf32>
    %8 = arith.addf %5, %7 : vector<128x128xf32>
    %cst_6 = arith.constant 0.000000e+00 : f32
    %9 = vector.broadcast %cst_6 : f32 to vector<128x128xf32>
    %10 = arith.maximumf %8, %9 : vector<128x128xf32>
    %11 = arith.truncf %10 : vector<128x128xf32> to vector<128x128xbf16>
    %c0_7 = arith.constant 0 : index
    %c0_8 = arith.constant 0 : index
    %12 = vector.load %arg6[%c0_7, %c0_8] : memref<128x128xbf16, #tpu.memory_space<vmem>>, vector<128x128xbf16>
    %cst_9 = arith.constant dense<0.000000e+00> : vector<128x128xf32>
    %13 = tpu.matmul %11, %12, %cst_9 {dimension_numbers = #tpu.dot_dimension_numbers<[1], [0], [0], [1], [0, 0, 1, 1], [], []>} : vector<128x128xbf16>, vector<128x128xbf16>, vector<128x128xf32> -> vector<128x128xf32>
    %c0_10 = arith.constant 0 : index
    %c0_11 = arith.constant 0 : index
    %14 = vector.load %arg7[%c0_10, %c0_11] : memref<1x128xf32, #tpu.memory_space<vmem>>, vector<1x128xf32>
    %15 = vector.broadcast %14 : vector<1x128xf32> to vector<128x128xf32>
    %16 = arith.addf %13, %15 : vector<128x128xf32>
    %17 = tpu.iota {dimensions = array<i32: 0>} : vector<8x128xi32>
    %c0_12 = arith.constant 0 : index
    %c0_13 = arith.constant 0 : index
    %18 = vector.load %arg2[%c0_12, %c0_13] : memref<1x128xi32, #tpu.memory_space<vmem>>, vector<1x128xi32>
    %19 = vector.broadcast %18 : vector<1x128xi32> to vector<8x128xi32>
    %20 = arith.cmpi eq, %19, %17 : vector<8x128xi32>
    %21 = arith.extui %20 : vector<8x128xi1> to vector<8x128xi32>
    %22 = arith.sitofp %21 : vector<8x128xi32> to vector<8x128xf32>
    %23 = arith.truncf %22 : vector<8x128xf32> to vector<8x128xbf16>
    %c0_14 = arith.constant 0 : index
    %c0_15 = arith.constant 0 : index
    %c0_16 = arith.constant 0 : index
    %24 = vector.load %arg8[%c0_14, %c0_15, %c0_16] : memref<1x8x128xf32, #tpu.memory_space<vmem>>, vector<1x8x128xf32>
    %25 = vector.shape_cast %24 : vector<1x8x128xf32> to vector<8x128xf32>
    %26 = arith.truncf %16 : vector<128x128xf32> to vector<128x128xbf16>
    %cst_17 = arith.constant dense<0.000000e+00> : vector<8x128xf32>
    %27 = tpu.matmul %23, %26, %cst_17 {dimension_numbers = #tpu.dot_dimension_numbers<[1], [0], [0], [1], [0, 0, 1, 1], [], []>} : vector<8x128xbf16>, vector<128x128xbf16>, vector<8x128xf32> -> vector<8x128xf32>
    %28 = arith.addf %25, %27 : vector<8x128xf32>
    %c0_18 = arith.constant 0 : index
    %c0_19 = arith.constant 0 : index
    %c0_20 = arith.constant 0 : index
    %29 = vector.load %arg8[%c0_18, %c0_19, %c0_20] : memref<1x8x128xf32, #tpu.memory_space<vmem>>, vector<1x8x128xf32>
    %30 = vector.shape_cast %29 : vector<1x8x128xf32> to vector<8x128xf32>
    %31 = vector.shape_cast %28 : vector<8x128xf32> to vector<1x8x128xf32>
    tpu.vector_store %arg8[%c0_18, %c0_19, %c0_20], %31 {strides = array<i32>} : memref<1x8x128xf32, #tpu.memory_space<vmem>>, vector<1x8x128xf32>,
    return
  }
  func.func @transform_0(%arg0: i32, %arg1: i32) -> (i32, i32) {
    %c1_i32 = arith.constant 1 : i32
    %0 = arith.muli %arg0, %c1_i32 : i32
    %1 = arith.addi %0, %arg1 : i32
    %c0_i32 = arith.constant 0 : i32
    %c0_i32_0 = arith.constant 0 : i32
    return %c0_i32, %1 : i32, i32
  }
  func.func @transform_1(%arg0: i32, %arg1: i32) -> (i32, i32) {
    %c1_i32 = arith.constant 1 : i32
    %0 = arith.muli %arg0, %c1_i32 : i32
    %1 = arith.addi %0, %arg1 : i32
    %c0_i32 = arith.constant 0 : i32
    %c0_i32_0 = arith.constant 0 : i32
    return %1, %c0_i32 : i32, i32
  }
  func.func @transform_2(%arg0: i32, %arg1: i32) -> (i32, i32) {
    %c0_i32 = arith.constant 0 : i32
    %c0_i32_0 = arith.constant 0 : i32
    %c0_i32_1 = arith.constant 0 : i32
    return %c0_i32, %c0_i32_0 : i32, i32
  }
  func.func @transform_3(%arg0: i32, %arg1: i32) -> (i32, i32) {
    %c0_i32 = arith.constant 0 : i32
    %c0_i32_0 = arith.constant 0 : i32
    %c0_i32_1 = arith.constant 0 : i32
    return %c0_i32, %c0_i32_0 : i32, i32
  }
  func.func @transform_4(%arg0: i32, %arg1: i32) -> (i32, i32) {
    %c0_i32 = arith.constant 0 : i32
    %c0_i32_0 = arith.constant 0 : i32
    %c0_i32_1 = arith.constant 0 : i32
    return %c0_i32, %c0_i32_0 : i32, i32
  }
  func.func @transform_5(%arg0: i32, %arg1: i32) -> (i32, i32) {
    %c0_i32 = arith.constant 0 : i32
    %c0_i32_0 = arith.constant 0 : i32
    %c0_i32_1 = arith.constant 0 : i32
    return %c0_i32, %c0_i32_0 : i32, i32
  }
  func.func @transform_6(%arg0: i32, %arg1: i32) -> (i32, i32, i32) {
    %c0_i32 = arith.constant 0 : i32
    %c0_i32_0 = arith.constant 0 : i32
    %c0_i32_1 = arith.constant 0 : i32
    return %arg0, %c0_i32, %c0_i32_0 : i32, i32, i32
  }
}

</mosaic_0001>

<bundles_post_ra>
// kernel: tpu_custom_call.1
= control target key start
LH: loop header
LB: loop body
LE: loop exit
PB: predicated region body
PF: predicated region fallthrough
CT: control target
= control target key end

     0   :  { %11 = vsyncpa [#allocation3], 0  ;;  %s1023_s0 = inlined_call_operand.hbm [shape: s32[1,128], index: 0, kind: input, shape index: {}]   ;;  %s1024_s1 = inlined_call_operand.hbm [shape: bf16[128,128], index: 1, kind: input, shape index: {}]   ;;  %s1025_s2 = inlined_call_operand.hbm [shape: bf16[128,128], index: 2, kind: input, shape index: {}]   ;;  %s1026_s3 = inlined_call_operand.vmem [shape: f32[1,128], index: 3, kind: input, shape index: {}]   ;;  %s1027_s4 = inlined_call_operand.hbm [shape: bf16[128,128], index: 4, kind: input, shape index: {}]   ;;  %s1028_s5 = inlined_call_operand.vmem [shape: f32[1,128], index: 5, kind: input, shape index: {}]   ;;  %s1029_s6 = inlined_call_operand.hbm [shape: f32[1,8,128], index: 6, kind: output, shape index: {}]  }
   0x1   :  { %12 = vsyncpa [#allocation6], 0 }
   0x2   :  { %13 = vsyncpa [#allocation9], 0 }
   0x3   :  { %14 = vsyncpa [#allocation4], 0  ;;  %s903_s21 = smov [#allocation5]   ;;  %s785_s25 = scalar_lea.hbm %s1024_s1, 1024 }
   0x4   :  { %s37_s22 = sshll.u32 %s903_s21, 4  ;;  %p786_p0 = scmp.ne.s32.totalorder %s1024_s1, %s785_s25  ;;  %s38_s22 = int_to_ptr.vmem [resolvable:$true] %s37_s22 }
   0x5   :  { %p789_p1 = scmp.lt.u32.totalorder %s785_s25, %s1024_s1 }
   0x7   :  { %p791_p2 = pnand %p789_p1, %p786_p0 }
   0x9   :  { %794 = shalt.err (!%p791_p2)
}
   0xa   :  { %s795_s30 = scalar_lea.vmem %s38_s22, 1024  ;;  %p800_p4 = scmp.lt.s32.totalorder %s38_s22, %s38_s22 }
   0xb   :  { %p796_p3 = scmp.ne.s32.totalorder %s38_s22, %s795_s30  ;;  %p801_p5 = scmp.lt.s32.totalorder %s795_s30, %s795_s30 }
   0xd   :  { %p802_p6 = por %p801_p5, %p800_p4 }
   0xf   :  { %p803_p7 = pnand %p802_p6, %p796_p3 }
  0x11   :  { %806 = shalt.err (!%p803_p7)
}
  0x12   :  { %s904_s7 = smov 64   ;;  %s905_s8 = smov 4  }
  0x13   :  { %43 = dma.hbm_to_vmem [thread:$0]  %s1024_s1, 1024, %s38_s22, [#allocation6], %s904_s7, %s904_s7, %s905_s8  }
  0x14   :  { %s906_s11 = smov [#allocation2]   ;;  %s907_s13 = smov [#allocation7]  }
  0x15   :  { %s24_s12 = sshll.u32 %s906_s11, 4  ;;  %s49_s14 = sshll.u32 %s907_s13, 4  ;;  %s25_s12 = int_to_ptr.vmem [resolvable:$true] %s24_s12  ;;  %s50_s14 = int_to_ptr.vmem [resolvable:$true] %s49_s14 }
  0x16   :  { %s807_s17 = scalar_lea.hbm %s1023_s0, 16 }
  0x17   :  { %p808_p8 = scmp.ne.s32.totalorder %s1023_s0, %s807_s17  ;;  %p811_p9 = scmp.lt.u32.totalorder %s807_s17, %s1023_s0 }
  0x19   :  { %p813_p10 = pnand %p811_p9, %p808_p8 }
  0x1b   :  { %816 = shalt.err (!%p813_p10)
}
  0x1c   :  { %s817_s1 = scalar_lea.vmem %s25_s12, 16  ;;  %s821_s22 = scalar_lea.vmem %s25_s12, 32 }
  0x1d   :  { %p818_p11 = scmp.ne.s32.totalorder %s25_s12, %s817_s1  ;;  %p822_p12 = scmp.lt.s32.totalorder %s25_s12, %s25_s12 }
  0x1e   :  { %p823_p13 = scmp.lt.s32.totalorder %s821_s22, %s817_s1 }
  0x20   :  { %p824_p0 = por %p823_p13, %p822_p12 }
  0x22   :  { %p825_p1 = pnand %p824_p0, %p818_p11 }
  0x24   :  { %828 = shalt.err (!%p825_p1)
}
  0x25   :  { %27 = dma.hbm_to_vmem [thread:$0]  %s1023_s0, 16, %s25_s12, [#allocation3]  }
  0x26   :  { %s829_s27 = scalar_lea.hbm %s1025_s2, 1024 }
  0x27   :  { %p830_p2 = scmp.ne.s32.totalorder %s1025_s2, %s829_s27  ;;  %p833_p3 = scmp.lt.u32.totalorder %s829_s27, %s1025_s2 }
  0x29   :  { %p835_p4 = pnand %p833_p3, %p830_p2 }
  0x2b   :  { %838 = shalt.err (!%p835_p4)
}
  0x2c   :  { %s839_s10 = scalar_lea.vmem %s50_s14, 1024  ;;  %p844_p6 = scmp.lt.s32.totalorder %s50_s14, %s50_s14 }
  0x2d   :  { %p840_p5 = scmp.ne.s32.totalorder %s50_s14, %s839_s10  ;;  %p845_p7 = scmp.lt.s32.totalorder %s839_s10, %s839_s10 }
  0x2f   :  { %p846_p8 = por %p845_p7, %p844_p6 }
  0x31   :  { %p847_p9 = pnand %p846_p8, %p840_p5 }
  0x33   :  { %850 = shalt.err (!%p847_p9)
}
  0x34   :  { %55 = dma.hbm_to_vmem [thread:$0]  %s1025_s2, 1024, %s50_s14, [#allocation6], %s904_s7, %s904_s7, %s905_s8  }
  0x35   :  { %s908_s12 = smov [#allocation8]   ;;  %s851_s17 = scalar_lea.hbm %s1027_s4, 1024 }
  0x36   :  { %s63_s13 = sshll.u32 %s908_s12, 4  ;;  %p852_p10 = scmp.ne.s32.totalorder %s1027_s4, %s851_s17  ;;  %s64_s13 = int_to_ptr.vmem [resolvable:$true] %s63_s13 }
  0x37   :  { %p855_p11 = scmp.lt.u32.totalorder %s851_s17, %s1027_s4 }
  0x39   :  { %p857_p12 = pnand %p855_p11, %p852_p10 }
  0x3b   :  { %860 = shalt.err (!%p857_p12)
}
  0x3c   :  { %s861_s1 = scalar_lea.vmem %s64_s13, 1024  ;;  %p866_p0 = scmp.lt.s32.totalorder %s64_s13, %s64_s13 }
  0x3d   :  { %p862_p13 = scmp.ne.s32.totalorder %s64_s13, %s861_s1  ;;  %p867_p1 = scmp.lt.s32.totalorder %s861_s1, %s861_s1 }
  0x3f   :  { %p868_p2 = por %p867_p1, %p866_p0 }
  0x41   :  { %p869_p3 = pnand %p868_p2, %p862_p13 }
  0x43   :  { %872 = shalt.err (!%p869_p3)
}
  0x44   :  { %69 = dma.hbm_to_vmem [thread:$0]  %s1027_s4, 1024, %s64_s13, [#allocation9], %s904_s7, %s904_s7, %s905_s8  }
  0x45   :  { %895 = dma.done.wait [#allocation3], 16  }
  0x46   :  { %896 = vsyncadd [#allocation3], 4294967280 }
  0x47   :  { %897 = dma.done.wait [#allocation6], 2048  }
  0x48   :  { %898 = vsyncadd [#allocation6], 4294965248 }
  0x49   :  { %899 = dma.done.wait [#allocation9], 1024  }
  0x4a   :  { %900 = vsyncadd [#allocation9], 4294966272  ;;  %v761_v0 = vld [vmem:[#allocation7] sm:$0xff]   ;;  %v762_v1 = vld [vmem:[#allocation7 + $0x8] sm:$0xff]   ;;  %vm910_vm0 = vmmov 0  }
  0x4b   :  { %667 = vmatprep.subr.bf16.mxu0 %v761_v0  ;;  %v763_v2 = vld [vmem:[#allocation7 + $0x10] sm:$0xff]   ;;  %v764_v3 = vld [vmem:[#allocation7 + $0x18] sm:$0xff]   ;;  %v769_v4 = vld [vmem:[#allocation5] sm:$0xff]  }
  0x4c   :  { %668 = vmatpush3.bf16.msra.mxu0 %v761_v0  ;;  %683 = vmatprep.mubr.bf16.mxu0 %v769_v4  ;;  %v765_v5 = vld [vmem:[#allocation7 + $0x20] sm:$0xff]   ;;  %v766_v6 = vld [vmem:[#allocation7 + $0x28] sm:$0xff]   ;;  %v767_v9 = vld [vmem:[#allocation7 + $0x30] sm:$0xff]  }
  0x4d   :  { %669 = vmatprep.subr.bf16.mxu0 %v762_v1  ;;  %v777_v7 = vld [vmem:[#allocation8] sm:$0xff]   ;;  %v778_v8 = vld [vmem:[#allocation8 + $0x8] sm:$0xff]   ;;  %v779_v10 = vld [vmem:[#allocation8 + $0x10] sm:$0xff]  }
  0x4e   :  { %699 = vmatprep.subr.bf16.mxu1 %v777_v7  ;;  %v768_v11 = vld [vmem:[#allocation7 + $0x38] sm:$0xff]   ;;  %v781_v13 = vld [vmem:[#allocation8 + $0x20] sm:$0xff]   ;;  %v770_v14 = vld [vmem:[#allocation5 + $0x8] sm:$0xff]  }
  0x4f   :  { %700 = vmatpush3.bf16.msra.mxu1 %v777_v7  ;;  %v780_v12 = vld [vmem:[#allocation8 + $0x18] sm:$0xff]   ;;  %v771_v15 = vld [vmem:[#allocation5 + $0x10] sm:$0xff]   ;;  %v782_v16 = vld [vmem:[#allocation8 + $0x28] sm:$0xff]  }
  0x50   :  { %670 = vmatpush3.bf16.msra.mxu0 %v762_v1  ;;  %701 = vmatprep.subr.bf16.mxu1 %v778_v8  ;;  %v772_v17 = vld [vmem:[#allocation5 + $0x18] sm:$0xff]   ;;  %v773_v18 = vld [vmem:[#allocation5 + $0x20] sm:$0xff]   ;;  %v774_v19 = vld [vmem:[#allocation5 + $0x28] sm:$0xff]  }
  0x51   :  { %671 = vmatprep.subr.bf16.mxu0 %v763_v2  ;;  %v775_v20 = vld [vmem:[#allocation5 + $0x30] sm:$0xff]   ;;  %v776_v21 = vld [vmem:[#allocation5 + $0x38] sm:$0xff]  }
  0x52   :  { %v783_v22 = vld [vmem:[#allocation8 + $0x30] sm:$0xff]   ;;  %v784_v23 = vld [vmem:[#allocation8 + $0x38] sm:$0xff]  }
  0x53   :  { %702 = vmatpush3.bf16.msra.mxu1 %v778_v8  ;;  %v596_v24 = vld [vmem:[%s1026_s3] ss:$0 sm:$0xff] }
  0x54   :  { %672 = vmatpush3.bf16.msra.mxu0 %v763_v2  ;;  %703 = vmatprep.subr.bf16.mxu1 %v779_v10 }
  0x55   :  { %673 = vmatprep.subr.bf16.mxu0 %v764_v3 }
  0x57   :  { %704 = vmatpush3.bf16.msra.mxu1 %v779_v10 }
  0x58   :  { %674 = vmatpush3.bf16.msra.mxu0 %v764_v3  ;;  %705 = vmatprep.subr.bf16.mxu1 %v780_v12 }
  0x59   :  { %675 = vmatprep.subr.bf16.mxu0 %v765_v5 }
  0x5b   :  { %706 = vmatpush3.bf16.msra.mxu1 %v780_v12 }
  0x5c   :  { %676 = vmatpush3.bf16.msra.mxu0 %v765_v5  ;;  %707 = vmatprep.subr.bf16.mxu1 %v781_v13 }
  0x5d   :  { %677 = vmatprep.subr.bf16.mxu0 %v766_v6 }
  0x5f   :  { %708 = vmatpush3.bf16.msra.mxu1 %v781_v13 }
  0x60   :  { %678 = vmatpush3.bf16.msra.mxu0 %v766_v6  ;;  %709 = vmatprep.subr.bf16.mxu1 %v782_v16 }
  0x61   :  { %679 = vmatprep.subr.bf16.mxu0 %v767_v9 }
  0x63   :  { %710 = vmatpush3.bf16.msra.mxu1 %v782_v16 }
  0x64   :  { %680 = vmatpush3.bf16.msra.mxu0 %v767_v9  ;;  %711 = vmatprep.subr.bf16.mxu1 %v783_v22 }
  0x65   :  { %681 = vmatprep.subr.bf16.mxu0 %v768_v11 }
  0x67   :  { %712 = vmatpush3.bf16.msra.mxu1 %v783_v22 }
  0x68   :  { %682 = vmatpush3.bf16.msra.mxu0 %v768_v11  ;;  %713 = vmatprep.subr.bf16.mxu1 %v784_v23 }
  0x6b   :  { %684 = vmatmul.mubr.bf16.vlgmr.msra.gmra.mrb[0].mxu0 %v770_v14  ;;  %714 = vmatpush3.bf16.msra.mxu1 %v784_v23 }
  0x6c   :  { %687 = vmatprep.mubr.bf16.mxu0 %v771_v15 }
  0x73   :  { %688 = vmatmul.mubr.bf16.gmra.mrb[4].mxu0 %v772_v17  ;;  %v909_v17 = vmov 0.0  }
  0x74   :  { %691 = vmatprep.mubr.bf16.mxu0 %v773_v18  ;;  %731 = vmatprep.subr.bf16.mxu0 %v909_v17 }
  0x7b   :  { %692 = vmatmul.mubr.bf16.gmra.mrb[8].mxu0 %v774_v19  ;;  %v613_v19 = vld [vmem:[%s1028_s5] ss:$0 sm:$0xff]  ;;  %s912_s5 = smov [#allocation10]  }
  0x7c   :  { %695 = vmatprep.mubr.bf16.mxu0 %v775_v20  ;;  %s585_s22 = sshll.u32 %s912_s5, 4  ;;  %s586_s22 = int_to_ptr.vmem [resolvable:$true] %s585_s22 }
  0x7d   :  { %s873_s23 = scalar_lea.vmem %s586_s22, 128  ;;  %p878_p5 = scmp.lt.s32.totalorder %s586_s22, %s586_s22 }
  0x7e   :  { %p874_p4 = scmp.ne.s32.totalorder %s586_s22, %s873_s23  ;;  %p879_p6 = scmp.lt.s32.totalorder %s873_s23, %s873_s23 }
  0x80   :  { %p880_p7 = por %p879_p6, %p878_p5 }
  0x82   :  { %p881_p8 = pnand %p880_p7, %p874_p4 }
  0x83   :  { %696 = vmatmul.mubr.bf16.gmra.mrb[12].mxu0 %v776_v21 }
  0x84   :  { %747 = vmatprep.mubr.msk.bf16.mxu0 %vm910_vm0, %v909_v17 }
 0x13e   :  { %v685_v25 = vpop.f32.mrb[0].mxu0 }
 0x13f   :  { %v271_v26 = vadd.f32 %v685_v25, %v596_v24  ;;  %v262_v27 = vpop.f32.mrb[1].mxu0 }
 0x140   :  { %v263_v28 = vadd.f32 %v596_v24, %v262_v27  ;;  %v686_v29 = vpop.f32.mrb[2].mxu0 }
 0x141   :  { %v274_v30 = vadd.f32 %v686_v29, %v596_v24  ;;  %v265_v31 = vpop.f32.mrb[3].mxu0  ;;  %v327_v33 = vmax.f32 %v271_v26, 0.0 }
 0x142   :  { %v266_v32 = vadd.f32 %v596_v24, %v265_v31  ;;  %v325_v35 = vmax.f32 %v263_v28, 0.0 }
 0x143   :  { %v328_v34 = vmax.f32 %v274_v30, 0.0 }
 0x144   :  { %v326_v36 = vmax.f32 %v266_v32, 0.0 }
 0x145   :  { %v342_v37 = vpack.c.bf16 %v328_v34, %v327_v33 }
 0x146   :  { %v689_v38 = vpop.f32.mrb[4].mxu0  ;;  %v341_v39 = vpack.c.bf16 %v326_v36, %v325_v35 }
 0x147   :  { %v287_v40 = vadd.f32 %v689_v38, %v596_v24  ;;  %v278_v41 = vpop.f32.mrb[5].mxu0 }
 0x148   :  { %v279_v42 = vadd.f32 %v596_v24, %v278_v41  ;;  %v690_v43 = vpop.f32.mrb[6].mxu0  ;;  %715 = vmatprep.mubr.bf16.mxu1 %v341_v39 }
 0x149   :  { %v290_v44 = vadd.f32 %v690_v43, %v596_v24  ;;  %v281_v45 = vpop.f32.mrb[7].mxu0  ;;  %716 = vmatmul.mubr.bf16.vlgmr.msra.gmra.mrb[0].mxu1 %v342_v37  ;;  %v331_v47 = vmax.f32 %v287_v40, 0.0 }
 0x14a   :  { %v282_v46 = vadd.f32 %v596_v24, %v281_v45  ;;  %v329_v49 = vmax.f32 %v279_v42, 0.0 }
 0x14b   :  { %v332_v48 = vmax.f32 %v290_v44, 0.0 }
 0x14c   :  { %v330_v50 = vmax.f32 %v282_v46, 0.0 }
 0x14d   :  { %v344_v51 = vpack.c.bf16 %v332_v48, %v331_v47 }
 0x14e   :  { %v343_v52 = vpack.c.bf16 %v330_v50, %v329_v49  ;;  %v693_v53 = vpop.f32.mrb[8].mxu0 }
 0x14f   :  { %v303_v54 = vadd.f32 %v693_v53, %v596_v24  ;;  %v294_v55 = vpop.f32.mrb[9].mxu0 }
 0x150   :  { %v295_v56 = vadd.f32 %v596_v24, %v294_v55  ;;  %v694_v57 = vpop.f32.mrb[10].mxu0  ;;  %719 = vmatprep.mubr.bf16.mxu1 %v343_v52 }
 0x151   :  { %v306_v58 = vadd.f32 %v694_v57, %v596_v24  ;;  %v297_v59 = vpop.f32.mrb[11].mxu0  ;;  %720 = vmatmul.mubr.bf16.gmra.mrb[4].mxu1 %v344_v51  ;;  %v335_v61 = vmax.f32 %v303_v54, 0.0  ;;  %v517_v51 = vlaneseq }
 0x152   :  { %v298_v60 = vadd.f32 %v596_v24, %v297_v59  ;;  %v333_v63 = vmax.f32 %v295_v56, 0.0 }
 0x153   :  { %v336_v62 = vmax.f32 %v306_v58, 0.0  ;;  %v518_v59 = vshrl.u32 %v517_v51, 7 }
 0x154   :  { %v334_v0 = vmax.f32 %v298_v60, 0.0 }
 0x155   :  { %v346_v1 = vpack.c.bf16 %v336_v62, %v335_v61  ;;  %v622_v61 = vld [vmem:[#allocation2] ss:$0 sm:$0xff]  ;;  %v911_v62 = vmov 1.0|1.0  }
 0x156   :  { %v345_v2 = vpack.c.bf16 %v334_v0, %v333_v63  ;;  %v697_v3 = vpop.f32.mrb[12].mxu0  ;;  %vm524_vm1 = vcmp.eq.s32.totalorder %v622_v61, %v518_v59 }
 0x157   :  { %v319_v4 = vadd.f32 %v697_v3, %v596_v24  ;;  %v310_v5 = vpop.f32.mrb[13].mxu0  ;;  %vm624_vm2 = vmpackc.low %vm524_vm1, %vm524_vm1 }
 0x158   :  { %v311_v6 = vadd.f32 %v596_v24, %v310_v5  ;;  %v698_v7 = vpop.f32.mrb[14].mxu0  ;;  %723 = vmatprep.mubr.bf16.mxu1 %v345_v2 }
 0x159   :  { %v322_v8 = vadd.f32 %v698_v7, %v596_v24  ;;  %v313_v9 = vpop.f32.mrb[15].mxu0  ;;  %724 = vmatmul.mubr.bf16.gmra.mrb[8].mxu1 %v346_v1  ;;  %v339_v11 = vmax.f32 %v319_v4, 0.0 }
 0x15a   :  { %v314_v10 = vadd.f32 %v596_v24, %v313_v9  ;;  %v337_v13 = vmax.f32 %v311_v6, 0.0 }
 0x15b   :  { %v340_v12 = vmax.f32 %v322_v8, 0.0 }
 0x15c   :  { %v338_v14 = vmax.f32 %v314_v10, 0.0 }
 0x15d   :  { %v348_v15 = vpack.c.bf16 %v340_v12, %v339_v11 }
 0x15e   :  { %v347_v16 = vpack.c.bf16 %v338_v14, %v337_v13 }
 0x160   :  { %727 = vmatprep.mubr.bf16.mxu1 %v347_v16 }
 0x161   :  { %728 = vmatmul.mubr.bf16.gmra.mrb[12].mxu1 %v348_v15 }
 0x21c   :  { %v717_v18 = vpop.f32.mrb[0].mxu1 }
 0x21d   :  { %v454_v20 = vpop.f32.mrb[1].mxu1  ;;  %v463_v22 = vadd.f32 %v717_v18, %v613_v19 }
 0x21e   :  { %v718_v21 = vpop.f32.mrb[2].mxu1  ;;  %v455_v25 = vadd.f32 %v613_v19, %v454_v20 }
 0x21f   :  { %v466_v23 = vadd.f32 %v718_v21, %v613_v19  ;;  %v457_v24 = vpop.f32.mrb[3].mxu1 }
 0x220   :  { %v458_v26 = vadd.f32 %v613_v19, %v457_v24 }
 0x221   :  { %v530_v27 = vpack.c.bf16 %v466_v23, %v463_v22 }
 0x222   :  { %v529_v28 = vpack.c.bf16 %v458_v26, %v455_v25 }
 0x224   :  { %v721_v29 = vpop.f32.mrb[4].mxu1  ;;  %732 = vmatpush3.bf16.msra.mxu0 %v529_v28 }
 0x225   :  { %v470_v30 = vpop.f32.mrb[5].mxu1  ;;  %733 = vmatprep.subr.bf16.mxu0 %v909_v17  ;;  %v479_v32 = vadd.f32 %v721_v29, %v613_v19 }
 0x226   :  { %v722_v31 = vpop.f32.mrb[6].mxu1  ;;  %v471_v35 = vadd.f32 %v613_v19, %v470_v30 }
 0x227   :  { %v482_v33 = vadd.f32 %v722_v31, %v613_v19  ;;  %v473_v34 = vpop.f32.mrb[7].mxu1 }
 0x228   :  { %v474_v36 = vadd.f32 %v613_v19, %v473_v34  ;;  %734 = vmatpush3.bf16.msra.mxu0 %v530_v27 }
 0x229   :  { %v532_v37 = vpack.c.bf16 %v482_v33, %v479_v32  ;;  %735 = vmatprep.subr.bf16.mxu0 %v909_v17 }
 0x22a   :  { %v531_v38 = vpack.c.bf16 %v474_v36, %v471_v35 }
 0x22c   :  { %v725_v39 = vpop.f32.mrb[8].mxu1  ;;  %736 = vmatpush3.bf16.msra.mxu0 %v531_v38 }
 0x22d   :  { %v486_v40 = vpop.f32.mrb[9].mxu1  ;;  %737 = vmatprep.subr.bf16.mxu0 %v909_v17  ;;  %v495_v42 = vadd.f32 %v725_v39, %v613_v19 }
 0x22e   :  { %v726_v41 = vpop.f32.mrb[10].mxu1  ;;  %v487_v45 = vadd.f32 %v613_v19, %v486_v40 }
 0x22f   :  { %v498_v43 = vadd.f32 %v726_v41, %v613_v19  ;;  %v489_v44 = vpop.f32.mrb[11].mxu1 }
 0x230   :  { %v490_v46 = vadd.f32 %v613_v19, %v489_v44  ;;  %738 = vmatpush3.bf16.msra.mxu0 %v532_v37 }
 0x231   :  { %v534_v47 = vpack.c.bf16 %v498_v43, %v495_v42  ;;  %739 = vmatprep.subr.bf16.mxu0 %v909_v17 }
 0x232   :  { %v533_v48 = vpack.c.bf16 %v490_v46, %v487_v45 }
 0x234   :  { %v729_v49 = vpop.f32.mrb[12].mxu1  ;;  %740 = vmatpush3.bf16.msra.mxu0 %v533_v48 }
 0x235   :  { %v502_v50 = vpop.f32.mrb[13].mxu1  ;;  %741 = vmatprep.subr.bf16.mxu0 %v909_v17  ;;  %v511_v53 = vadd.f32 %v729_v49, %v613_v19 }
 0x236   :  { %v730_v52 = vpop.f32.mrb[14].mxu1  ;;  %v503_v56 = vadd.f32 %v613_v19, %v502_v50 }
 0x237   :  { %v514_v54 = vadd.f32 %v730_v52, %v613_v19  ;;  %v505_v55 = vpop.f32.mrb[15].mxu1 }
 0x238   :  { %v506_v57 = vadd.f32 %v613_v19, %v505_v55  ;;  %742 = vmatpush3.bf16.msra.mxu0 %v534_v47 }
 0x239   :  { %v536_v58 = vpack.c.bf16 %v514_v54, %v511_v53  ;;  %743 = vmatprep.subr.bf16.mxu0 %v909_v17 }
 0x23a   :  { %v535_v60 = vpack.c.bf16 %v506_v57, %v503_v56 }
 0x23c   :  { %744 = vmatpush3.bf16.msra.mxu0 %v535_v60 }
 0x23d   :  { %745 = vmatprep.subr.bf16.mxu0 %v909_v17 }
 0x240   :  { %746 = vmatpush3.bf16.msra.mxu0 %v536_v58 }
 0x243   :  { %748 = vmatmul.mubr.msk.bf16.vlgmr.msra.gmra.mrb[16].mxu0 %vm624_vm2, %v911_v62 }
 0x316   :  { %v571_v63 = vpop.f32.mrb[16].mxu0 }
 0x317   :  { %v749_v0 = vpop.f32.mrb[17].mxu0  ;;  %578 = vst [vmem:[#allocation10] sm:$0xff] %v571_v63 }
 0x318   :  { %v574_v1 = vpop.f32.mrb[18].mxu0 }
 0x319   :  { %v750_v2 = vpop.f32.mrb[19].mxu0 }
 0x31a   :  { %884 = shalt.err (!%p881_p8)
}
 0x31b   :  { %s885_s26 = scalar_lea.hbm %s1029_s6, 128 }
 0x31c   :  { %p886_p9 = scmp.ne.s32.totalorder %s1029_s6, %s885_s26  ;;  %p889_p10 = scmp.lt.u32.totalorder %s885_s26, %s1029_s6 }
 0x31e   :  { %p891_p11 = pnand %p889_p10, %p886_p9 }
 0x320   :  { %894 = shalt.err (!%p891_p11)
}
 0x321   :  { %588 = dma.vmem_to_hbm [thread:$0]  %s586_s22, 128, %s1029_s6, [#allocation4]  }
 0x322   :  { %901 = dma.done.wait [#allocation4], 128  }
 0x323   :  { %902 = vsyncadd [#allocation4], 4294967168 }
 0x324   :  { %592 = vsyncpa [#allocation3], 1 }
 0x325   :  { %593 = vsyncpa [#allocation6], 1 }
 0x326   :  { %594 = vsyncpa [#allocation9], 1 }
 0x327   :  { %595 = vsyncpa [#allocation4], 1 }

</bundles_post_ra>
